<compile_context>
chip_gen: v7x
topology: tpu7x:2x2x1
jax: 0.10.0
libtpu: 0.0.40
codegen_flags: <defaults>
</compile_context>

<pallas_src>
import functools
import math

import jax
import jax.numpy as jnp
from jax import lax
from jax.experimental import pallas as pl
from jax.experimental.pallas import tpu as pltpu


# --------------------------------------------------------------------------- #
# Fused "head" Pallas kernel:
#   bucketing embeddings (one-hot @ table)  ->  fuse_embedding linear
#   (flatten/concat fused as partial matmuls) -> single-step GRU -> critic head
# --------------------------------------------------------------------------- #
def _fused_head_kernel(
    # batch-tiled inputs
    rgb_ref, rho_ref, phi_ref, t_ref, mask_ref, h_ref,
    # embedding tables
    dtab_ref, atab_ref, ttab_ref,
    # fuse_embedding weights, split along the concat axis (flatten/concat fused)
    w_rgb_ref, w_dist_ref, w_ang_ref, w_time_ref, b_fuse_ref,
    # GRU weights, gate order (r, z, n) as in torch.nn.GRU; shape (3, H, H) / (3, 1, H)
    w_i_ref, b_i_ref, w_h_ref, b_h_ref,
    # critic head
    w_c_ref, b_c_ref,
    # outputs
    critic_ref, h_out_ref,
    *, dist_cfg, ang_cfg, time_cfg):
    f32 = jnp.float32

    def bucket_one_hot(vals, cfg):
        # BucketingEmbedding index computation, as a (TM, count) one-hot matrix.
        min_v, max_v, count, use_log = cfg
        x = jnp.log2(vals) if use_log else vals
        x = count * (x - min_v) / (max_v - min_v)
        # torch.clamp(x, 0, count-1).long(): clamp (nonneg) then truncate.
        idx = jnp.clip(x, 0.0, float(count - 1)).astype(jnp.int32)          # (TM, 1)
        lanes = lax.broadcasted_iota(jnp.int32, (vals.shape[0], count), 1)   # (TM, count)
        return (lanes == idx).astype(f32)

    # Embedding lookups as MXU matmuls (gather via one-hot).
    emb_d = jnp.dot(bucket_one_hot(rho_ref[...], dist_cfg), dtab_ref[...],
                    preferred_element_type=f32)
    emb_a = jnp.dot(bucket_one_hot(phi_ref[...], ang_cfg), atab_ref[...],
                    preferred_element_type=f32)
    emb_t = jnp.dot(bucket_one_hot(t_ref[...], time_cfg), ttab_ref[...],
                    preferred_element_type=f32)

    # fuse_embedding(concat([rgb_flat, emb_d, emb_a, emb_t])) with the flatten /
    # concat folded away: each chunk is an LHS tile of a partial matmul.
    fused = (jnp.dot(rgb_ref[...], w_rgb_ref[...], preferred_element_type=f32)
             + jnp.dot(emb_d, w_dist_ref[...], preferred_element_type=f32)
             + jnp.dot(emb_a, w_ang_ref[...], preferred_element_type=f32)
             + jnp.dot(emb_t, w_time_ref[...], preferred_element_type=f32)
             + b_fuse_ref[...])

    # Single-step GRU (the x.size(0) == hxs.size(0) path of _forward_gru).
    h_prev = h_ref[...] * mask_ref[...]

    def sig(v):
        return 1.0 / (1.0 + jnp.exp(-v))

    def gates(k):
        gi = jnp.dot(fused, w_i_ref[k], preferred_element_type=f32) + b_i_ref[k]
        gh = jnp.dot(h_prev, w_h_ref[k], preferred_element_type=f32) + b_h_ref[k]
        return gi, gh

    gi_r, gh_r = gates(0)
    gi_z, gh_z = gates(1)
    gi_n, gh_n = gates(2)
    r = sig(gi_r + gh_r)
    z = sig(gi_z + gh_z)
    n = jnp.tanh(gi_n + r * gh_n)
    h_new = (1.0 - z) * n + z * h_prev

    h_out_ref[...] = h_new
    critic_ref[...] = jnp.dot(h_new, w_c_ref[...], preferred_element_type=f32) + b_c_ref[...]


def _pick_batch_tile(n):
    # Use the full batch if it is small / not sublane-aligned; otherwise an
    # 8-aligned tile (<=256 rows) so tiles pipeline and shard over v7x's 2 TCs.
    if n <= 8 or n % 8 != 0:
        return n
    tm = 8
    while tm * 2 <= min(n, 256) and n % (tm * 2) == 0:
        tm *= 2
    return tm


def cnn_base_head_pallas(rgb_flat, rho, phi, tval, masks, h_prev, params, cfgs):
    n = rgb_flat.shape[0]
    hidden = h_prev.shape[1]
    tm = _pick_batch_tile(n)
    grid = (n // tm,)

    def batch_spec(width):
        return pl.BlockSpec((tm, width), lambda i: (i, 0))

    def full_spec(shape):
        if len(shape) == 3:
            return pl.BlockSpec(shape, lambda i: (0, 0, 0))
        return pl.BlockSpec(shape, lambda i: (0, 0))

    p = params
    kernel = functools.partial(
        _fused_head_kernel,
        dist_cfg=cfgs["DISTANCE"], ang_cfg=cfgs["ANGLE"], time_cfg=cfgs["TIME"])

    in_specs = [
        batch_spec(rgb_flat.shape[1]),
        batch_spec(1), batch_spec(1), batch_spec(1), batch_spec(1),
        batch_spec(hidden),
        full_spec(p["dist_table"].shape), full_spec(p["ang_table"].shape),
        full_spec(p["time_table"].shape),
        full_spec(p["w_rgb"].shape), full_spec(p["w_dist"].shape),
        full_spec(p["w_ang"].shape), full_spec(p["w_time"].shape),
        full_spec(p["b_fuse"].shape),
        full_spec(p["w_i"].shape), full_spec(p["b_i"].shape),
        full_spec(p["w_h"].shape), full_spec(p["b_h"].shape),
        full_spec(p["w_c"].shape), full_spec(p["b_c"].shape),
    ]
    out_specs = (batch_spec(1), batch_spec(hidden))
    out_shape = (jax.ShapeDtypeStruct((n, 1), jnp.float32),
                 jax.ShapeDtypeStruct((n, hidden), jnp.float32))

    critic, h_new = pl.pallas_call(
        kernel,
        grid=grid,
        in_specs=in_specs,
        out_specs=out_specs,
        out_shape=out_shape,
        compiler_params=pltpu.CompilerParams(
            dimension_semantics=("parallel",)),   # batch tiles are independent
    )(rgb_flat, rho, phi, tval, masks, h_prev,
      p["dist_table"], p["ang_table"], p["time_table"],
      p["w_rgb"], p["w_dist"], p["w_ang"], p["w_time"], p["b_fuse"],
      p["w_i"], p["b_i"], p["w_h"], p["b_h"], p["w_c"], p["b_c"])
    return critic, h_new


# --------------------------------------------------------------------------- #
# Non-Pallas glue: rgb_encoder conv stack (tiny channel counts -> left to XLA).
# --------------------------------------------------------------------------- #
def _conv_bn_relu_pool(x, w, b, gamma, beta, eps=1e-5):
    y = lax.conv_general_dilated(x, w, window_strides=(1, 1), padding="SAME",
                                 dimension_numbers=("NCHW", "OIHW", "NCHW"))
    y = y + b[None, :, None, None]
    # BatchNorm2d in train() mode: batch statistics, biased variance.
    mean = jnp.mean(y, axis=(0, 2, 3), keepdims=True)
    var = jnp.mean((y - mean) ** 2, axis=(0, 2, 3), keepdims=True)
    y = (y - mean) / jnp.sqrt(var + eps)
    y = y * gamma[None, :, None, None] + beta[None, :, None, None]
    y = jnp.maximum(y, 0.0)
    y = lax.reduce_window(y, -jnp.inf, lax.max,
                          window_dimensions=(1, 1, 2, 2),
                          window_strides=(1, 1, 2, 2), padding="VALID")
    return y


def _preprocess(inputs, params, img_mean, img_std):
    x_rgb = inputs["rgb_at_t"]
    # TODO(synk): exact process_image() semantics unavailable; assumed per-channel
    # standardize with img_mean/img_std (module defaults are 0/1 -> identity).
    mean = jnp.asarray(img_mean, jnp.float32)[None, :, None, None]
    std = jnp.asarray(img_std, jnp.float32)[None, :, None, None]
    x_rgb = (x_rgb - mean) / std

    # TODO(synk): the 3->2->1->1-channel conv/BN/ReLU/maxpool stack is left to XLA;
    # at these channel counts it cannot use the MXU and has no efficient Pallas tiling.
    y = _conv_bn_relu_pool(x_rgb, params["conv1_w"], params["conv1_b"],
                           params["bn1_g"], params["bn1_b"])
    y = _conv_bn_relu_pool(y, params["conv2_w"], params["conv2_b"],
                           params["bn2_g"], params["bn2_b"])
    y = _conv_bn_relu_pool(y, params["conv3_w"], params["conv3_b"],
                           params["bn3_g"], params["bn3_b"])
    # Flatten: metadata-only reshape; consumed directly as the LHS tile of the
    # fuse_embedding matmul inside the Pallas kernel (no copy kernel).
    rgb_flat = y.reshape(y.shape[0], -1)

    x_goal = inputs["goal_at_t"]
    x_time = jnp.squeeze(inputs["t"], axis=1)
    x_rho = jnp.linalg.norm(x_goal, axis=1)
    x_phi = jnp.arctan2(x_goal[:, 1], x_goal[:, 0])
    return rgb_flat, x_rho[:, None], x_phi[:, None], x_time[:, None]


def cnn_base_forward(inputs, rnn_hxs, masks, params, cfgs,
                     img_mean=(0.0, 0.0, 0.0), img_std=(1.0, 1.0, 1.0)):
    """CNNBase.forward: returns (critic_value, x, rnn_hxs)."""
    rgb_flat, rho, phi, tval = _preprocess(inputs, params, img_mean, img_std)
    h_prev = jnp.squeeze(rnn_hxs, axis=1)          # rnn_hxs.squeeze(1)
    # TODO(synk): only the single-step GRU path (x.size(0)==hxs.size(0)) is
    # implemented; the multi-timestep mask-segmented rollout loop is not.
    critic, h_new = cnn_base_head_pallas(rgb_flat, rho, phi, tval, masks,
                                         h_prev, params, cfgs)
    return critic, h_new, h_new[:, None, :]


# --------------------------------------------------------------------------- #
# Pure-JAX reference for the fused head (for correctness checking).
# --------------------------------------------------------------------------- #
def _head_reference(rgb_flat, rho, phi, tval, masks, h_prev, params, cfgs):
    def bucket(vals, cfg):
        min_v, max_v, count, use_log = cfg
        x = jnp.log2(vals) if use_log else vals
        x = count * (x - min_v) / (max_v - min_v)
        return jnp.clip(x, 0.0, count - 1).astype(jnp.int32)

    emb_d = params["dist_table"][bucket(rho[:, 0], cfgs["DISTANCE"])]
    emb_a = params["ang_table"][bucket(phi[:, 0], cfgs["ANGLE"])]
    emb_t = params["time_table"][bucket(tval[:, 0], cfgs["TIME"])]
    feats = jnp.concatenate([rgb_flat, emb_d, emb_a, emb_t], axis=1)
    w_fuse = jnp.concatenate([params["w_rgb"], params["w_dist"],
                              params["w_ang"], params["w_time"]], axis=0)
    fused = feats @ w_fuse + params["b_fuse"]

    h0 = h_prev * masks
    sig = lambda v: 1.0 / (1.0 + jnp.exp(-v))
    gi = [fused @ params["w_i"][k] + params["b_i"][k] for k in range(3)]
    gh = [h0 @ params["w_h"][k] + params["b_h"][k] for k in range(3)]
    r = sig(gi[0] + gh[0])
    z = sig(gi[1] + gh[1])
    n = jnp.tanh(gi[2] + r * gh[2])
    h_new = (1.0 - z) * n + z * h0
    critic = h_new @ params["w_c"] + params["b_c"]
    return critic, h_new


def cnn_base_forward_reference(inputs, rnn_hxs, masks, params, cfgs,
                               img_mean=(0.0, 0.0, 0.0), img_std=(1.0, 1.0, 1.0)):
    rgb_flat, rho, phi, tval = _preprocess(inputs, params, img_mean, img_std)
    h_prev = jnp.squeeze(rnn_hxs, axis=1)
    critic, h_new = _head_reference(rgb_flat, rho, phi, tval, masks, h_prev, params, cfgs)
    return critic, h_new, h_new[:, None, :]


# --------------------------------------------------------------------------- #
# Parameter / config construction
# --------------------------------------------------------------------------- #
def make_bucket_cfg(min_val, max_val, count, use_log):
    if use_log:
        min_val, max_val = math.log2(min_val), math.log2(max_val)
    return (float(min_val), float(max_val), int(count), bool(use_log))


def init_params(key, f_rgb, hidden, cfgs, emb_dims):
    ks = jax.random.split(key, 16)
    s = 0.1
    dd, da, dt = emb_dims
    cd, ca, ct = cfgs["DISTANCE"][2], cfgs["ANGLE"][2], cfgs["TIME"][2]
    p = {
        "conv1_w": s * jax.random.normal(ks[0], (2, 3, 3, 3), jnp.float32),
        "conv1_b": jnp.zeros((2,), jnp.float32),
        "bn1_g": jnp.ones((2,), jnp.float32), "bn1_b": jnp.zeros((2,), jnp.float32),
        "conv2_w": s * jax.random.normal(ks[1], (1, 2, 3, 3), jnp.float32),
        "conv2_b": jnp.zeros((1,), jnp.float32),
        "bn2_g": jnp.ones((1,), jnp.float32), "bn2_b": jnp.zeros((1,), jnp.float32),
        "conv3_w": s * jax.random.normal(ks[2], (1, 1, 3, 3), jnp.float32),
        "conv3_b": jnp.zeros((1,), jnp.float32),
        "bn3_g": jnp.ones((1,), jnp.float32), "bn3_b": jnp.zeros((1,), jnp.float32),
        "dist_table": s * jax.random.normal(ks[3], (cd, dd), jnp.float32),
        "ang_table": s * jax.random.normal(ks[4], (ca, da), jnp.float32),
        "time_table": s * jax.random.normal(ks[5], (ct, dt), jnp.float32),
        "w_rgb": s * jax.random.normal(ks[6], (f_rgb, hidden), jnp.float32),
        "w_dist": s * jax.random.normal(ks[7], (dd, hidden), jnp.float32),
        "w_ang": s * jax.random.normal(ks[8], (da, hidden), jnp.float32),
        "w_time": s * jax.random.normal(ks[9], (dt, hidden), jnp.float32),
        "b_fuse": jnp.zeros((1, hidden), jnp.float32),
        "w_i": s * jax.random.normal(ks[10], (3, hidden, hidden), jnp.float32),
        "b_i": jnp.zeros((3, 1, hidden), jnp.float32),
        "w_h": s * jax.random.normal(ks[11], (3, hidden, hidden), jnp.float32),
        "b_h": jnp.zeros((3, 1, hidden), jnp.float32),
        "w_c": s * jax.random.normal(ks[12], (hidden, 1), jnp.float32),
        "b_c": jnp.zeros((1, 1), jnp.float32),
    }
    return p


if __name__ == "__main__":
    key = jax.random.PRNGKey(0)
    batch, hidden = 2, 32
    imH = imW = 16                       # small test spatial size
    f_rgb = 1 * (imH // 8) * (imW // 8)  # conv stack: channels ->1, spatial /8

    cfgs = {
        "DISTANCE": make_bucket_cfg(0.1, 20.0, 16, True),
        "ANGLE": make_bucket_cfg(-math.pi, math.pi, 16, False),
        "TIME": make_bucket_cfg(0.0, 100.0, 16, False),
    }
    emb_dims = (8, 8, 8)

    k_par, k_rgb, k_h = jax.random.split(key, 3)
    params = init_params(k_par, f_rgb, hidden, cfgs, emb_dims)

    inputs = {
        "rgb_at_t": jax.random.normal(k_rgb, (batch, 3, imH, imW), jnp.float32),
        "goal_at_t": jnp.array([[1.0, 2.0], [-3.0, 0.5]], jnp.float32),
        "t": jnp.array([[3.7], [42.3]], jnp.float32),
    }
    rnn_hxs = 0.1 * jax.random.normal(k_h, (batch, 1, hidden), jnp.float32)
    masks = jnp.array([[1.0], [0.0]], jnp.float32)

    critic, x_out, rnn_out = cnn_base_forward(inputs, rnn_hxs, masks, params, cfgs)
    critic.block_until_ready()
    x_out.block_until_ready()
    rnn_out.block_until_ready()

    critic_ref, x_ref, rnn_ref = cnn_base_forward_reference(inputs, rnn_hxs, masks,
                                                            params, cfgs)

    assert critic.shape == (batch, 1)
    assert x_out.shape == (batch, hidden)
    assert rnn_out.shape == (batch, 1, hidden)
    assert bool(jnp.allclose(critic, critic_ref, atol=2e-3, rtol=2e-3))
    assert bool(jnp.allclose(x_out, x_ref, atol=2e-3, rtol=2e-3))
    assert bool(jnp.allclose(rnn_out, rnn_ref, atol=2e-3, rtol=2e-3))

    print("KERNEL_OK")
</pallas_src>

<mosaic_0001>
module attributes {stable_mosaic.version = 11 : i64} {
  func.func @_fused_head_kernel(%arg0: i32, %arg1: memref<2x4xf32, #tpu.memory_space<vmem>>, %arg2: memref<2x1xf32, #tpu.memory_space<vmem>>, %arg3: memref<2x1xf32, #tpu.memory_space<vmem>>, %arg4: memref<2x1xf32, #tpu.memory_space<vmem>>, %arg5: memref<2x1xf32, #tpu.memory_space<vmem>>, %arg6: memref<2x32xf32, #tpu.memory_space<vmem>>, %arg7: memref<16x8xf32, #tpu.memory_space<vmem>>, %arg8: memref<16x8xf32, #tpu.memory_space<vmem>>, %arg9: memref<16x8xf32, #tpu.memory_space<vmem>>, %arg10: memref<4x32xf32, #tpu.memory_space<vmem>>, %arg11: memref<8x32xf32, #tpu.memory_space<vmem>>, %arg12: memref<8x32xf32, #tpu.memory_space<vmem>>, %arg13: memref<8x32xf32, #tpu.memory_space<vmem>>, %arg14: memref<1x32xf32, #tpu.memory_space<vmem>>, %arg15: memref<3x32x32xf32, #tpu.memory_space<vmem>>, %arg16: memref<3x1x32xf32, #tpu.memory_space<vmem>>, %arg17: memref<3x32x32xf32, #tpu.memory_space<vmem>>, %arg18: memref<3x1x32xf32, #tpu.memory_space<vmem>>, %arg19: memref<32x1xf32, #tpu.memory_space<vmem>>, %arg20: memref<1x1xf32, #tpu.memory_space<vmem>>, %arg21: memref<2x1xf32, #tpu.memory_space<vmem>>, %arg22: memref<2x32xf32, #tpu.memory_space<vmem>>) attributes {dimension_semantics = [#tpu.dimension_semantics<parallel>], iteration_bounds = array<i64: 1>, scalar_prefetch = 0 : i64, scratch_operands = 0 : i64, tpu.core_type = #tpu.core_type<tc>, window_params = [{transform_indices = @transform_0, window_bounds = array<i64: 2, 4>}, {transform_indices = @transform_1, window_bounds = array<i64: 2, 1>}, {transform_indices = @transform_2, window_bounds = array<i64: 2, 1>}, {transform_indices = @transform_3, window_bounds = array<i64: 2, 1>}, {transform_indices = @transform_4, window_bounds = array<i64: 2, 1>}, {transform_indices = @transform_5, window_bounds = array<i64: 2, 32>}, {pipeline_mode = #tpu.pipeline_mode<synchronous>, transform_indices = @transform_6, window_bounds = array<i64: 16, 8>}, {pipeline_mode = #tpu.pipeline_mode<synchronous>, transform_indices = @transform_7, window_bounds = array<i64: 16, 8>}, {pipeline_mode = #tpu.pipeline_mode<synchronous>, transform_indices = @transform_8, window_bounds = array<i64: 16, 8>}, {pipeline_mode = #tpu.pipeline_mode<synchronous>, transform_indices = @transform_9, window_bounds = array<i64: 4, 32>}, {pipeline_mode = #tpu.pipeline_mode<synchronous>, transform_indices = @transform_10, window_bounds = array<i64: 8, 32>}, {pipeline_mode = #tpu.pipeline_mode<synchronous>, transform_indices = @transform_11, window_bounds = array<i64: 8, 32>}, {pipeline_mode = #tpu.pipeline_mode<synchronous>, transform_indices = @transform_12, window_bounds = array<i64: 8, 32>}, {pipeline_mode = #tpu.pipeline_mode<synchronous>, transform_indices = @transform_13, window_bounds = array<i64: 1, 32>}, {pipeline_mode = #tpu.pipeline_mode<synchronous>, transform_indices = @transform_14, window_bounds = array<i64: 3, 32, 32>}, {pipeline_mode = #tpu.pipeline_mode<synchronous>, transform_indices = @transform_15, window_bounds = array<i64: 3, 1, 32>}, {pipeline_mode = #tpu.pipeline_mode<synchronous>, transform_indices = @transform_16, window_bounds = array<i64: 3, 32, 32>}, {pipeline_mode = #tpu.pipeline_mode<synchronous>, transform_indices = @transform_17, window_bounds = array<i64: 3, 1, 32>}, {pipeline_mode = #tpu.pipeline_mode<synchronous>, transform_indices = @transform_18, window_bounds = array<i64: 32, 1>}, {pipeline_mode = #tpu.pipeline_mode<synchronous>, transform_indices = @transform_19, window_bounds = array<i64: 1, 1>}, {transform_indices = @transform_20, window_bounds = array<i64: 2, 1>}, {transform_indices = @transform_21, window_bounds = array<i64: 2, 32>}]} {
    %c0 = arith.constant 0 : index
    %c0_0 = arith.constant 0 : index
    %0 = vector.load %arg2[%c0, %c0_0] : memref<2x1xf32, #tpu.memory_space<vmem>>, vector<2x1xf32>
    %1 = math.log %0 : vector<2x1xf32>
    %cst = arith.constant 2.000000e+00 : f32
    %2 = math.log %cst : f32
    %3 = vector.broadcast %2 : f32 to vector<2x1xf32>
    %4 = arith.divf %1, %3 : vector<2x1xf32>
    %cst_1 = arith.constant -3.32192802 : f32
    %5 = vector.broadcast %cst_1 : f32 to vector<2x1xf32>
    %6 = arith.subf %4, %5 : vector<2x1xf32>
    %cst_2 = arith.constant 1.600000e+01 : f32
    %7 = vector.broadcast %cst_2 : f32 to vector<2x1xf32>
    %8 = arith.mulf %7, %6 : vector<2x1xf32>
    %cst_3 = arith.constant 7.64385605 : f32
    %9 = vector.broadcast %cst_3 : f32 to vector<2x1xf32>
    %10 = arith.divf %8, %9 : vector<2x1xf32>
    %cst_4 = arith.constant 0.000000e+00 : f32
    %cst_5 = arith.constant 1.500000e+01 : f32
    %11 = vector.broadcast %cst_4 : f32 to vector<2x1xf32>
    %12 = arith.maximumf %11, %10 : vector<2x1xf32>
    %13 = vector.broadcast %cst_5 : f32 to vector<2x1xf32>
    %14 = arith.minimumf %13, %12 : vector<2x1xf32>
    %15 = arith.fptosi %14 : vector<2x1xf32> to vector<2x1xi32>
    %16 = tpu.iota {dimensions = array<i32: 1>} : vector<2x16xi32>
    %17 = vector.broadcast %15 : vector<2x1xi32> to vector<2x16xi32>
    %18 = arith.cmpi eq, %16, %17 : vector<2x16xi32>
    %19 = arith.extui %18 : vector<2x16xi1> to vector<2x16xi32>
    %20 = arith.sitofp %19 : vector<2x16xi32> to vector<2x16xf32>
    %c0_6 = arith.constant 0 : index
    %c0_7 = arith.constant 0 : index
    %21 = vector.load %arg7[%c0_6, %c0_7] : memref<16x8xf32, #tpu.memory_space<vmem>>, vector<16x8xf32>
    %cst_8 = arith.constant dense<0.000000e+00> : vector<2x8xf32>
    %22 = tpu.matmul %20, %21, %cst_8 {dimension_numbers = #tpu.dot_dimension_numbers<[1], [0], [0], [1], [0, 0, 1, 1], [], []>} : vector<2x16xf32>, vector<16x8xf32>, vector<2x8xf32> -> vector<2x8xf32>
    %c0_9 = arith.constant 0 : index
    %c0_10 = arith.constant 0 : index
    %23 = vector.load %arg3[%c0_9, %c0_10] : memref<2x1xf32, #tpu.memory_space<vmem>>, vector<2x1xf32>
    %cst_11 = arith.constant -3.14159274 : f32
    %24 = vector.broadcast %cst_11 : f32 to vector<2x1xf32>
    %25 = arith.subf %23, %24 : vector<2x1xf32>
    %cst_12 = arith.constant 1.600000e+01 : f32
    %26 = vector.broadcast %cst_12 : f32 to vector<2x1xf32>
    %27 = arith.mulf %26, %25 : vector<2x1xf32>
    %cst_13 = arith.constant 6.28318548 : f32
    %28 = vector.broadcast %cst_13 : f32 to vector<2x1xf32>
    %29 = arith.divf %27, %28 : vector<2x1xf32>
    %cst_14 = arith.constant 0.000000e+00 : f32
    %cst_15 = arith.constant 1.500000e+01 : f32
    %30 = vector.broadcast %cst_14 : f32 to vector<2x1xf32>
    %31 = arith.maximumf %30, %29 : vector<2x1xf32>
    %32 = vector.broadcast %cst_15 : f32 to vector<2x1xf32>
    %33 = arith.minimumf %32, %31 : vector<2x1xf32>
    %34 = arith.fptosi %33 : vector<2x1xf32> to vector<2x1xi32>
    %35 = tpu.iota {dimensions = array<i32: 1>} : vector<2x16xi32>
    %36 = vector.broadcast %34 : vector<2x1xi32> to vector<2x16xi32>
    %37 = arith.cmpi eq, %35, %36 : vector<2x16xi32>
    %38 = arith.extui %37 : vector<2x16xi1> to vector<2x16xi32>
    %39 = arith.sitofp %38 : vector<2x16xi32> to vector<2x16xf32>
    %c0_16 = arith.constant 0 : index
    %c0_17 = arith.constant 0 : index
    %40 = vector.load %arg8[%c0_16, %c0_17] : memref<16x8xf32, #tpu.memory_space<vmem>>, vector<16x8xf32>
    %cst_18 = arith.constant dense<0.000000e+00> : vector<2x8xf32>
    %41 = tpu.matmul %39, %40, %cst_18 {dimension_numbers = #tpu.dot_dimension_numbers<[1], [0], [0], [1], [0, 0, 1, 1], [], []>} : vector<2x16xf32>, vector<16x8xf32>, vector<2x8xf32> -> vector<2x8xf32>
    %c0_19 = arith.constant 0 : index
    %c0_20 = arith.constant 0 : index
    %42 = vector.load %arg4[%c0_19, %c0_20] : memref<2x1xf32, #tpu.memory_space<vmem>>, vector<2x1xf32>
    %cst_21 = arith.constant 0.000000e+00 : f32
    %43 = vector.broadcast %cst_21 : f32 to vector<2x1xf32>
    %44 = arith.subf %42, %43 : vector<2x1xf32>
    %cst_22 = arith.constant 1.600000e+01 : f32
    %45 = vector.broadcast %cst_22 : f32 to vector<2x1xf32>
    %46 = arith.mulf %45, %44 : vector<2x1xf32>
    %cst_23 = arith.constant 1.000000e+02 : f32
    %47 = vector.broadcast %cst_23 : f32 to vector<2x1xf32>
    %48 = arith.divf %46, %47 : vector<2x1xf32>
    %cst_24 = arith.constant 0.000000e+00 : f32
    %cst_25 = arith.constant 1.500000e+01 : f32
    %49 = vector.broadcast %cst_24 : f32 to vector<2x1xf32>
    %50 = arith.maximumf %49, %48 : vector<2x1xf32>
    %51 = vector.broadcast %cst_25 : f32 to vector<2x1xf32>
    %52 = arith.minimumf %51, %50 : vector<2x1xf32>
    %53 = arith.fptosi %52 : vector<2x1xf32> to vector<2x1xi32>
    %54 = tpu.iota {dimensions = array<i32: 1>} : vector<2x16xi32>
    %55 = vector.broadcast %53 : vector<2x1xi32> to vector<2x16xi32>
    %56 = arith.cmpi eq, %54, %55 : vector<2x16xi32>
    %57 = arith.extui %56 : vector<2x16xi1> to vector<2x16xi32>
    %58 = arith.sitofp %57 : vector<2x16xi32> to vector<2x16xf32>
    %c0_26 = arith.constant 0 : index
    %c0_27 = arith.constant 0 : index
    %59 = vector.load %arg9[%c0_26, %c0_27] : memref<16x8xf32, #tpu.memory_space<vmem>>, vector<16x8xf32>
    %cst_28 = arith.constant dense<0.000000e+00> : vector<2x8xf32>
    %60 = tpu.matmul %58, %59, %cst_28 {dimension_numbers = #tpu.dot_dimension_numbers<[1], [0], [0], [1], [0, 0, 1, 1], [], []>} : vector<2x16xf32>, vector<16x8xf32>, vector<2x8xf32> -> vector<2x8xf32>
    %c0_29 = arith.constant 0 : index
    %c0_30 = arith.constant 0 : index
    %61 = vector.load %arg1[%c0_29, %c0_30] : memref<2x4xf32, #tpu.memory_space<vmem>>, vector<2x4xf32>
    %c0_31 = arith.constant 0 : index
    %c0_32 = arith.constant 0 : index
    %62 = vector.load %arg10[%c0_31, %c0_32] : memref<4x32xf32, #tpu.memory_space<vmem>>, vector<4x32xf32>
    %cst_33 = arith.constant dense<0.000000e+00> : vector<2x32xf32>
    %63 = tpu.matmul %61, %62, %cst_33 {dimension_numbers = #tpu.dot_dimension_numbers<[1], [0], [0], [1], [0, 0, 1, 1], [], []>} : vector<2x4xf32>, vector<4x32xf32>, vector<2x32xf32> -> vector<2x32xf32>
    %c0_34 = arith.constant 0 : index
    %c0_35 = arith.constant 0 : index
    %64 = vector.load %arg11[%c0_34, %c0_35] : memref<8x32xf32, #tpu.memory_space<vmem>>, vector<8x32xf32>
    %cst_36 = arith.constant dense<0.000000e+00> : vector<2x32xf32>
    %65 = tpu.matmul %22, %64, %cst_36 {dimension_numbers = #tpu.dot_dimension_numbers<[1], [0], [0], [1], [0, 0, 1, 1], [], []>} : vector<2x8xf32>, vector<8x32xf32>, vector<2x32xf32> -> vector<2x32xf32>
    %66 = arith.addf %63, %65 : vector<2x32xf32>
    %c0_37 = arith.constant 0 : index
    %c0_38 = arith.constant 0 : index
    %67 = vector.load %arg12[%c0_37, %c0_38] : memref<8x32xf32, #tpu.memory_space<vmem>>, vector<8x32xf32>
    %cst_39 = arith.constant dense<0.000000e+00> : vector<2x32xf32>
    %68 = tpu.matmul %41, %67, %cst_39 {dimension_numbers = #tpu.dot_dimension_numbers<[1], [0], [0], [1], [0, 0, 1, 1], [], []>} : vector<2x8xf32>, vector<8x32xf32>, vector<2x32xf32> -> vector<2x32xf32>
    %69 = arith.addf %66, %68 : vector<2x32xf32>
    %c0_40 = arith.constant 0 : index
    %c0_41 = arith.constant 0 : index
    %70 = vector.load %arg13[%c0_40, %c0_41] : memref<8x32xf32, #tpu.memory_space<vmem>>, vector<8x32xf32>
    %cst_42 = arith.constant dense<0.000000e+00> : vector<2x32xf32>
    %71 = tpu.matmul %60, %70, %cst_42 {dimension_numbers = #tpu.dot_dimension_numbers<[1], [0], [0], [1], [0, 0, 1, 1], [], []>} : vector<2x8xf32>, vector<8x32xf32>, vector<2x32xf32> -> vector<2x32xf32>
    %72 = arith.addf %69, %71 : vector<2x32xf32>
    %c0_43 = arith.constant 0 : index
    %c0_44 = arith.constant 0 : index
    %73 = vector.load %arg14[%c0_43, %c0_44] : memref<1x32xf32, #tpu.memory_space<vmem>>, vector<1x32xf32>
    %74 = vector.broadcast %73 : vector<1x32xf32> to vector<2x32xf32>
    %75 = arith.addf %72, %74 : vector<2x32xf32>
    %c0_45 = arith.constant 0 : index
    %c0_46 = arith.constant 0 : index
    %76 = vector.load %arg6[%c0_45, %c0_46] : memref<2x32xf32, #tpu.memory_space<vmem>>, vector<2x32xf32>
    %c0_47 = arith.constant 0 : index
    %c0_48 = arith.constant 0 : index
    %77 = vector.load %arg5[%c0_47, %c0_48] : memref<2x1xf32, #tpu.memory_space<vmem>>, vector<2x1xf32>
    %78 = vector.broadcast %77 : vector<2x1xf32> to vector<2x32xf32>
    %79 = arith.mulf %76, %78 : vector<2x32xf32>
    %c0_49 = arith.constant 0 : index
    %c0_50 = arith.constant 0 : index
    %c0_51 = arith.constant 0 : index
    %80 = vector.load %arg15[%c0_49, %c0_50, %c0_51] : memref<3x32x32xf32, #tpu.memory_space<vmem>>, vector<1x32x32xf32>
    %81 = vector.shape_cast %80 : vector<1x32x32xf32> to vector<32x32xf32>
    %cst_52 = arith.constant dense<0.000000e+00> : vector<2x32xf32>
    %82 = tpu.matmul %75, %81, %cst_52 {dimension_numbers = #tpu.dot_dimension_numbers<[1], [0], [0], [1], [0, 0, 1, 1], [], []>} : vector<2x32xf32>, vector<32x32xf32>, vector<2x32xf32> -> vector<2x32xf32>
    %c0_53 = arith.constant 0 : index
    %c0_54 = arith.constant 0 : index
    %c0_55 = arith.constant 0 : index
    %83 = vector.load %arg16[%c0_53, %c0_54, %c0_55] : memref<3x1x32xf32, #tpu.memory_space<vmem>>, vector<1x1x32xf32>
    %84 = vector.shape_cast %83 : vector<1x1x32xf32> to vector<1x32xf32>
    %85 = vector.broadcast %84 : vector<1x32xf32> to vector<2x32xf32>
    %86 = arith.addf %82, %85 : vector<2x32xf32>
    %c0_56 = arith.constant 0 : index
    %c0_57 = arith.constant 0 : index
    %c0_58 = arith.constant 0 : index
    %87 = vector.load %arg17[%c0_56, %c0_57, %c0_58] : memref<3x32x32xf32, #tpu.memory_space<vmem>>, vector<1x32x32xf32>
    %88 = vector.shape_cast %87 : vector<1x32x32xf32> to vector<32x32xf32>
    %cst_59 = arith.constant dense<0.000000e+00> : vector<2x32xf32>
    %89 = tpu.matmul %79, %88, %cst_59 {dimension_numbers = #tpu.dot_dimension_numbers<[1], [0], [0], [1], [0, 0, 1, 1], [], []>} : vector<2x32xf32>, vector<32x32xf32>, vector<2x32xf32> -> vector<2x32xf32>
    %c0_60 = arith.constant 0 : index
    %c0_61 = arith.constant 0 : index
    %c0_62 = arith.constant 0 : index
    %90 = vector.load %arg18[%c0_60, %c0_61, %c0_62] : memref<3x1x32xf32, #tpu.memory_space<vmem>>, vector<1x1x32xf32>
    %91 = vector.shape_cast %90 : vector<1x1x32xf32> to vector<1x32xf32>
    %92 = vector.broadcast %91 : vector<1x32xf32> to vector<2x32xf32>
    %93 = arith.addf %89, %92 : vector<2x32xf32>
    %c1 = arith.constant 1 : index
    %c0_63 = arith.constant 0 : index
    %c0_64 = arith.constant 0 : index
    %94 = vector.load %arg15[%c1, %c0_63, %c0_64] : memref<3x32x32xf32, #tpu.memory_space<vmem>>, vector<1x32x32xf32>
    %95 = vector.shape_cast %94 : vector<1x32x32xf32> to vector<32x32xf32>
    %cst_65 = arith.constant dense<0.000000e+00> : vector<2x32xf32>
    %96 = tpu.matmul %75, %95, %cst_65 {dimension_numbers = #tpu.dot_dimension_numbers<[1], [0], [0], [1], [0, 0, 1, 1], [], []>} : vector<2x32xf32>, vector<32x32xf32>, vector<2x32xf32> -> vector<2x32xf32>
    %c1_66 = arith.constant 1 : index
    %c0_67 = arith.constant 0 : index
    %c0_68 = arith.constant 0 : index
    %97 = vector.load %arg16[%c1_66, %c0_67, %c0_68] : memref<3x1x32xf32, #tpu.memory_space<vmem>>, vector<1x1x32xf32>
    %98 = vector.shape_cast %97 : vector<1x1x32xf32> to vector<1x32xf32>
    %99 = vector.broadcast %98 : vector<1x32xf32> to vector<2x32xf32>
    %100 = arith.addf %96, %99 : vector<2x32xf32>
    %c1_69 = arith.constant 1 : index
    %c0_70 = arith.constant 0 : index
    %c0_71 = arith.constant 0 : index
    %101 = vector.load %arg17[%c1_69, %c0_70, %c0_71] : memref<3x32x32xf32, #tpu.memory_space<vmem>>, vector<1x32x32xf32>
    %102 = vector.shape_cast %101 : vector<1x32x32xf32> to vector<32x32xf32>
    %cst_72 = arith.constant dense<0.000000e+00> : vector<2x32xf32>
    %103 = tpu.matmul %79, %102, %cst_72 {dimension_numbers = #tpu.dot_dimension_numbers<[1], [0], [0], [1], [0, 0, 1, 1], [], []>} : vector<2x32xf32>, vector<32x32xf32>, vector<2x32xf32> -> vector<2x32xf32>
    %c1_73 = arith.constant 1 : index
    %c0_74 = arith.constant 0 : index
    %c0_75 = arith.constant 0 : index
    %104 = vector.load %arg18[%c1_73, %c0_74, %c0_75] : memref<3x1x32xf32, #tpu.memory_space<vmem>>, vector<1x1x32xf32>
    %105 = vector.shape_cast %104 : vector<1x1x32xf32> to vector<1x32xf32>
    %106 = vector.broadcast %105 : vector<1x32xf32> to vector<2x32xf32>
    %107 = arith.addf %103, %106 : vector<2x32xf32>
    %c2 = arith.constant 2 : index
    %c0_76 = arith.constant 0 : index
    %c0_77 = arith.constant 0 : index
    %108 = vector.load %arg15[%c2, %c0_76, %c0_77] : memref<3x32x32xf32, #tpu.memory_space<vmem>>, vector<1x32x32xf32>
    %109 = vector.shape_cast %108 : vector<1x32x32xf32> to vector<32x32xf32>
    %cst_78 = arith.constant dense<0.000000e+00> : vector<2x32xf32>
    %110 = tpu.matmul %75, %109, %cst_78 {dimension_numbers = #tpu.dot_dimension_numbers<[1], [0], [0], [1], [0, 0, 1, 1], [], []>} : vector<2x32xf32>, vector<32x32xf32>, vector<2x32xf32> -> vector<2x32xf32>
    %c2_79 = arith.constant 2 : index
    %c0_80 = arith.constant 0 : index
    %c0_81 = arith.constant 0 : index
    %111 = vector.load %arg16[%c2_79, %c0_80, %c0_81] : memref<3x1x32xf32, #tpu.memory_space<vmem>>, vector<1x1x32xf32>
    %112 = vector.shape_cast %111 : vector<1x1x32xf32> to vector<1x32xf32>
    %113 = vector.broadcast %112 : vector<1x32xf32> to vector<2x32xf32>
    %114 = arith.addf %110, %113 : vector<2x32xf32>
    %c2_82 = arith.constant 2 : index
    %c0_83 = arith.constant 0 : index
    %c0_84 = arith.constant 0 : index
    %115 = vector.load %arg17[%c2_82, %c0_83, %c0_84] : memref<3x32x32xf32, #tpu.memory_space<vmem>>, vector<1x32x32xf32>
    %116 = vector.shape_cast %115 : vector<1x32x32xf32> to vector<32x32xf32>
    %cst_85 = arith.constant dense<0.000000e+00> : vector<2x32xf32>
    %117 = tpu.matmul %79, %116, %cst_85 {dimension_numbers = #tpu.dot_dimension_numbers<[1], [0], [0], [1], [0, 0, 1, 1], [], []>} : vector<2x32xf32>, vector<32x32xf32>, vector<2x32xf32> -> vector<2x32xf32>
    %c2_86 = arith.constant 2 : index
    %c0_87 = arith.constant 0 : index
    %c0_88 = arith.constant 0 : index
    %118 = vector.load %arg18[%c2_86, %c0_87, %c0_88] : memref<3x1x32xf32, #tpu.memory_space<vmem>>, vector<1x1x32xf32>
    %119 = vector.shape_cast %118 : vector<1x1x32xf32> to vector<1x32xf32>
    %120 = vector.broadcast %119 : vector<1x32xf32> to vector<2x32xf32>
    %121 = arith.addf %117, %120 : vector<2x32xf32>
    %122 = arith.addf %86, %93 : vector<2x32xf32>
    %cst_89 = arith.constant 0.000000e+00 : f32
    %123 = vector.broadcast %cst_89 : f32 to vector<2x32xf32>
    %124 = arith.subf %123, %122 : vector<2x32xf32>
    %125 = math.exp %124 : vector<2x32xf32>
    %cst_90 = arith.constant 1.000000e+00 : f32
    %126 = vector.broadcast %cst_90 : f32 to vector<2x32xf32>
    %127 = arith.addf %126, %125 : vector<2x32xf32>
    %cst_91 = arith.constant 1.000000e+00 : f32
    %128 = vector.broadcast %cst_91 : f32 to vector<2x32xf32>
    %129 = arith.divf %128, %127 : vector<2x32xf32>
    %130 = arith.addf %100, %107 : vector<2x32xf32>
    %cst_92 = arith.constant 0.000000e+00 : f32
    %131 = vector.broadcast %cst_92 : f32 to vector<2x32xf32>
    %132 = arith.subf %131, %130 : vector<2x32xf32>
    %133 = math.exp %132 : vector<2x32xf32>
    %cst_93 = arith.constant 1.000000e+00 : f32
    %134 = vector.broadcast %cst_93 : f32 to vector<2x32xf32>
    %135 = arith.addf %134, %133 : vector<2x32xf32>
    %cst_94 = arith.constant 1.000000e+00 : f32
    %136 = vector.broadcast %cst_94 : f32 to vector<2x32xf32>
    %137 = arith.divf %136, %135 : vector<2x32xf32>
    %138 = arith.mulf %129, %121 : vector<2x32xf32>
    %139 = arith.addf %114, %138 : vector<2x32xf32>
    %140 = math.tanh %139 : vector<2x32xf32>
    %cst_95 = arith.constant 1.000000e+00 : f32
    %141 = vector.broadcast %cst_95 : f32 to vector<2x32xf32>
    %142 = arith.subf %141, %137 : vector<2x32xf32>
    %143 = arith.mulf %142, %140 : vector<2x32xf32>
    %144 = arith.mulf %137, %79 : vector<2x32xf32>
    %145 = arith.addf %143, %144 : vector<2x32xf32>
    %c0_96 = arith.constant 0 : index
    %c0_97 = arith.constant 0 : index
    %146 = vector.load %arg22[%c0_96, %c0_97] : memref<2x32xf32, #tpu.memory_space<vmem>>, vector<2x32xf32>
    tpu.vector_store %arg22[%c0_96, %c0_97], %145 {strides = array<i32>} : memref<2x32xf32, #tpu.memory_space<vmem>>, vector<2x32xf32>,
    %c0_98 = arith.constant 0 : index
    %c0_99 = arith.constant 0 : index
    %147 = vector.load %arg19[%c0_98, %c0_99] : memref<32x1xf32, #tpu.memory_space<vmem>>, vector<32x1xf32>
    %cst_100 = arith.constant dense<0.000000e+00> : vector<2x1xf32>
    %148 = tpu.matmul %145, %147, %cst_100 {dimension_numbers = #tpu.dot_dimension_numbers<[1], [0], [0], [1], [0, 0, 1, 1], [], []>} : vector<2x32xf32>, vector<32x1xf32>, vector<2x1xf32> -> vector<2x1xf32>
    %c0_101 = arith.constant 0 : index
    %c0_102 = arith.constant 0 : index
    %149 = vector.load %arg20[%c0_101, %c0_102] : memref<1x1xf32, #tpu.memory_space<vmem>>, vector<1x1xf32>
    %150 = vector.broadcast %149 : vector<1x1xf32> to vector<2x1xf32>
    %151 = arith.addf %148, %150 : vector<2x1xf32>
    %c0_103 = arith.constant 0 : index
    %c0_104 = arith.constant 0 : index
    %152 = vector.load %arg21[%c0_103, %c0_104] : memref<2x1xf32, #tpu.memory_space<vmem>>, vector<2x1xf32>
    tpu.vector_store %arg21[%c0_103, %c0_104], %151 {strides = array<i32>} : memref<2x1xf32, #tpu.memory_space<vmem>>, vector<2x1xf32>,
    return
  }
  func.func @transform_0(%arg0: i32) -> (i32, i32) {
    %c0_i32 = arith.constant 0 : i32
    %c0_i32_0 = arith.constant 0 : i32
    return %arg0, %c0_i32 : i32, i32
  }
  func.func @transform_1(%arg0: i32) -> (i32, i32) {
    %c0_i32 = arith.constant 0 : i32
    %c0_i32_0 = arith.constant 0 : i32
    return %arg0, %c0_i32 : i32, i32
  }
  func.func @transform_2(%arg0: i32) -> (i32, i32) {
    %c0_i32 = arith.constant 0 : i32
    %c0_i32_0 = arith.constant 0 : i32
    return %arg0, %c0_i32 : i32, i32
  }
  func.func @transform_3(%arg0: i32) -> (i32, i32) {
    %c0_i32 = arith.constant 0 : i32
    %c0_i32_0 = arith.constant 0 : i32
    return %arg0, %c0_i32 : i32, i32
  }
  func.func @transform_4(%arg0: i32) -> (i32, i32) {
    %c0_i32 = arith.constant 0 : i32
    %c0_i32_0 = arith.constant 0 : i32
    return %arg0, %c0_i32 : i32, i32
  }
  func.func @transform_5(%arg0: i32) -> (i32, i32) {
    %c0_i32 = arith.constant 0 : i32
    %c0_i32_0 = arith.constant 0 : i32
    return %arg0, %c0_i32 : i32, i32
  }
  func.func @transform_6(%arg0: i32) -> (i32, i32) {
    %c0_i32 = arith.constant 0 : i32
    %c0_i32_0 = arith.constant 0 : i32
    %c0_i32_1 = arith.constant 0 : i32
    return %c0_i32, %c0_i32_0 : i32, i32
  }
  func.func @transform_7(%arg0: i32) -> (i32, i32) {
    %c0_i32 = arith.constant 0 : i32
    %c0_i32_0 = arith.constant 0 : i32
    %c0_i32_1 = arith.constant 0 : i32
    return %c0_i32, %c0_i32_0 : i32, i32
  }
  func.func @transform_8(%arg0: i32) -> (i32, i32) {
    %c0_i32 = arith.constant 0 : i32
    %c0_i32_0 = arith.constant 0 : i32
    %c0_i32_1 = arith.constant 0 : i32
    return %c0_i32, %c0_i32_0 : i32, i32
  }
  func.func @transform_9(%arg0: i32) -> (i32, i32) {
    %c0_i32 = arith.constant 0 : i32
    %c0_i32_0 = arith.constant 0 : i32
    %c0_i32_1 = arith.constant 0 : i32
    return %c0_i32, %c0_i32_0 : i32, i32
  }
  func.func @transform_10(%arg0: i32) -> (i32, i32) {
    %c0_i32 = arith.constant 0 : i32
    %c0_i32_0 = arith.constant 0 : i32
    %c0_i32_1 = arith.constant 0 : i32
    return %c0_i32, %c0_i32_0 : i32, i32
  }
  func.func @transform_11(%arg0: i32) -> (i32, i32) {
    %c0_i32 = arith.constant 0 : i32
    %c0_i32_0 = arith.constant 0 : i32
    %c0_i32_1 = arith.constant 0 : i32
    return %c0_i32, %c0_i32_0 : i32, i32
  }
  func.func @transform_12(%arg0: i32) -> (i32, i32) {
    %c0_i32 = arith.constant 0 : i32
    %c0_i32_0 = arith.constant 0 : i32
    %c0_i32_1 = arith.constant 0 : i32
    return %c0_i32, %c0_i32_0 : i32, i32
  }
  func.func @transform_13(%arg0: i32) -> (i32, i32) {
    %c0_i32 = arith.constant 0 : i32
    %c0_i32_0 = arith.constant 0 : i32
    %c0_i32_1 = arith.constant 0 : i32
    return %c0_i32, %c0_i32_0 : i32, i32
  }
  func.func @transform_14(%arg0: i32) -> (i32, i32, i32) {
    %c0_i32 = arith.constant 0 : i32
    %c0_i32_0 = arith.constant 0 : i32
    %c0_i32_1 = arith.constant 0 : i32
    %c0_i32_2 = arith.constant 0 : i32
    return %c0_i32, %c0_i32_0, %c0_i32_1 : i32, i32, i32
  }
  func.func @transform_15(%arg0: i32) -> (i32, i32, i32) {
    %c0_i32 = arith.constant 0 : i32
    %c0_i32_0 = arith.constant 0 : i32
    %c0_i32_1 = arith.constant 0 : i32
    %c0_i32_2 = arith.constant 0 : i32
    return %c0_i32, %c0_i32_0, %c0_i32_1 : i32, i32, i32
  }
  func.func @transform_16(%arg0: i32) -> (i32, i32, i32) {
    %c0_i32 = arith.constant 0 : i32
    %c0_i32_0 = arith.constant 0 : i32
    %c0_i32_1 = arith.constant 0 : i32
    %c0_i32_2 = arith.constant 0 : i32
    return %c0_i32, %c0_i32_0, %c0_i32_1 : i32, i32, i32
  }
  func.func @transform_17(%arg0: i32) -> (i32, i32, i32) {
    %c0_i32 = arith.constant 0 : i32
    %c0_i32_0 = arith.constant 0 : i32
    %c0_i32_1 = arith.constant 0 : i32
    %c0_i32_2 = arith.constant 0 : i32
    return %c0_i32, %c0_i32_0, %c0_i32_1 : i32, i32, i32
  }
  func.func @transform_18(%arg0: i32) -> (i32, i32) {
    %c0_i32 = arith.constant 0 : i32
    %c0_i32_0 = arith.constant 0 : i32
    %c0_i32_1 = arith.constant 0 : i32
    return %c0_i32, %c0_i32_0 : i32, i32
  }
  func.func @transform_19(%arg0: i32) -> (i32, i32) {
    %c0_i32 = arith.constant 0 : i32
    %c0_i32_0 = arith.constant 0 : i32
    %c0_i32_1 = arith.constant 0 : i32
    return %c0_i32, %c0_i32_0 : i32, i32
  }
  func.func @transform_20(%arg0: i32) -> (i32, i32) {
    %c0_i32 = arith.constant 0 : i32
    %c0_i32_0 = arith.constant 0 : i32
    return %arg0, %c0_i32 : i32, i32
  }
  func.func @transform_21(%arg0: i32) -> (i32, i32) {
    %c0_i32 = arith.constant 0 : i32
    %c0_i32_0 = arith.constant 0 : i32
    return %arg0, %c0_i32 : i32, i32
  }
}

</mosaic_0001>

<bundles_post_ra>
// kernel: tpu_custom_call.1
= control target key start
LH: loop header
LB: loop body
LE: loop exit
PB: predicated region body
PF: predicated region fallthrough
CT: control target
= control target key end

     0   :  { %s1985_s0 = inlined_call_operand.vmem [shape: f32[2,4], index: 0, kind: input, shape index: {}]   ;;  %s1986_s1 = inlined_call_operand.vmem [shape: f32[2,1], index: 1, kind: input, shape index: {}]   ;;  %s1987_s2 = inlined_call_operand.vmem [shape: f32[2,1], index: 2, kind: input, shape index: {}]   ;;  %s1988_s3 = inlined_call_operand.vmem [shape: f32[2,1], index: 3, kind: input, shape index: {}]   ;;  %s1989_s4 = inlined_call_operand.vmem [shape: f32[2,1], index: 4, kind: input, shape index: {}]   ;;  %s1990_s5 = inlined_call_operand.vmem [shape: f32[2,32], index: 5, kind: input, shape index: {}]   ;;  %s1991_s6 = inlined_call_operand.vmem [shape: f32[16,8], index: 6, kind: input, shape index: {}]   ;;  %s1992_s7 = inlined_call_operand.vmem [shape: f32[16,8], index: 7, kind: input, shape index: {}]   ;;  %s1993_s8 = inlined_call_operand.vmem [shape: f32[16,8], index: 8, kind: input, shape index: {}]   ;;  %s1994_s9 = inlined_call_operand.vmem [shape: f32[4,32], index: 9, kind: input, shape index: {}]   ;;  %s1995_s10 = inlined_call_operand.vmem [shape: f32[8,32], index: 10, kind: input, shape index: {}]   ;;  %s1996_s11 = inlined_call_operand.vmem [shape: f32[8,32], index: 11, kind: input, shape index: {}]   ;;  %s1997_s12 = inlined_call_operand.vmem [shape: f32[8,32], index: 12, kind: input, shape index: {}]   ;;  %s1998_s13 = inlined_call_operand.vmem [shape: f32[1,32], index: 13, kind: input, shape index: {}]   ;;  %s1999_s14 = inlined_call_operand.vmem [shape: f32[3,32,32], index: 14, kind: input, shape index: {}]   ;;  %s2000_s15 = inlined_call_operand.vmem [shape: f32[3,1,32], index: 15, kind: input, shape index: {}]   ;;  %s2001_s16 = inlined_call_operand.hbm [shape: f32[3,32,32], index: 16, kind: input, shape index: {}]   ;;  %s2002_s17 = inlined_call_operand.vmem [shape: f32[3,1,32], index: 17, kind: input, shape index: {}]   ;;  %s2003_s18 = inlined_call_operand.vmem [shape: f32[32,1], index: 18, kind: input, shape index: {}]   ;;  %s2004_s19 = inlined_call_operand.<no memory space> [shape: f32[1,1], index: 19, kind: input, shape index: {}]   ;;  %s2005_s20 = inlined_call_operand.vmem [shape: f32[2,1], index: 20, kind: output, shape index: {0}]   ;;  %s2006_s21 = inlined_call_operand.hbm [shape: f32[2,32], index: 21, kind: output, shape index: {1}]  }
   0x1   :  { %2007 = sst [smem:[#allocation9_spill]] %s1985_s0  ;;  %v27_v0 = vstv %s2004_s19 }
   0x2   :  { %2008 = sst [smem:[#allocation10_spill]] %s1986_s1  ;;  %28 = vst [vmem:[#allocation2] sm:$0x1] %v27_v0 }
   0x3   :  { %2009 = sst [smem:[#allocation11_spill]] %s1987_s2 }
   0x4   :  { %2010 = sst [smem:[#allocation12_spill]] %s1988_s3 }
   0x5   :  { %2011 = sst [smem:[#allocation13_spill]] %s1989_s4 }
   0x6   :  { %2012 = sst [smem:[#allocation14_spill]] %s1990_s5 }
   0x7   :  { %29 = vsyncpa [#allocation4], 0 }
   0x8   :  { %30 = vsyncpa [#allocation5], 0  ;;  %s1652_s26 = smov [#allocation3]   ;;  %s1604_s29 = scalar_lea.hbm %s2001_s16, 1536 }
   0x9   :  { %s68_s27 = sshll.u32 %s1652_s26, 4  ;;  %p1605_p0 = scmp.ne.s32.totalorder %s2001_s16, %s1604_s29  ;;  %s69_s27 = int_to_ptr.vmem [resolvable:$true] %s68_s27 }
   0xa   :  { %p1608_p1 = scmp.lt.u32.totalorder %s1604_s29, %s2001_s16 }
   0xc   :  { %p1610_p2 = pnand %p1608_p1, %p1605_p0 }
   0xe   :  { %1613 = shalt.err (!%p1610_p2)
}
   0xf   :  { %s1614_s19 = scalar_lea.vmem %s69_s27, 1536  ;;  %p1619_p4 = scmp.lt.s32.totalorder %s69_s27, %s69_s27 }
  0x10   :  { %p1615_p3 = scmp.ne.s32.totalorder %s69_s27, %s1614_s19  ;;  %p1620_p5 = scmp.lt.s32.totalorder %s1614_s19, %s1614_s19 }
  0x12   :  { %p1621_p6 = por %p1620_p5, %p1619_p4 }
  0x14   :  { %p1622_p7 = pnand %p1621_p6, %p1615_p3 }
  0x16   :  { %1625 = shalt.err (!%p1622_p7)
}
  0x17   :  { %s1653_s22 = smov 128   ;;  %s1654_s23 = smov 8  }
  0x18   :  { %74 = dma.hbm_to_vmem [thread:$0]  %s2001_s16, 1536, %s69_s27, [#allocation4], %s1653_s22, %s1653_s22, %s1654_s23  }
  0x19   :  { %1648 = dma.done.wait [#allocation4], 1536  }
  0x1a   :  { %1649 = vsyncadd [#allocation4], 4294965760  ;;  %v1655_v1 = vmov 0   ;;  %v1656_v2 = vmov 0.0|0.0   ;;  %s2013_s26 = sld [smem:[#allocation10_spill]]  ;;  %s2014_s29 = sld [smem:[#allocation12_spill]]  ;;  %v96_v37 = vlaneseq }
  0x1b   :  { %1590 = vset.pattern.permute.xlu0 %v1655_v1  ;;  %1591 = vset.pattern.permute.xlu1 %v1655_v1  ;;  %v104_v6 = vld [vmem:[%s1991_s6] sm:$0xff]  ;;  %v105_v7 = vld [vmem:[%s1991_s6 + $0x8] sm:$0xff]  ;;  %s2015_s19 = sld [smem:[#allocation11_spill]]  ;;  %s2016_s23 = sld [smem:[#allocation13_spill]]  ;;  %vm1657_vm0 = vmmov 0   ;;  %v1658_v35 = vmov 0.0  }
  0x1c   :  { %1517 = vmatprep.subr.bf16.mxu0 %v1656_v2  ;;  %1520 = vmatprep.subr.bf16.mxu1 %v1656_v2  ;;  %v1518_v10 = vpack.c.bf16 %v105_v7, %v104_v6  ;;  %v194_v33 = vld [vmem:[%s1992_s7] sm:$0xff]  ;;  %v195_v34 = vld [vmem:[%s1992_s7 + $0x8] sm:$0xff]  ;;  %v97_v38 = vand.u32 127, %v96_v37  ;;  %vm106_vm1 = vcmask 130048   ;;  %vm438_vm5 = vcmask 1043456   ;;  %s2017_s0 = sld [smem:[#allocation9_spill]] }
  0x1d   :  { %1403 = vmatprep.mubr.msk.f32.mxu0 %vm1657_vm0, %v1658_v35  ;;  %v1521_v36 = vpack.c.bf16 %v195_v34, %v194_v33  ;;  %1410 = vmatprep.mubr.msk.f32.mxu1 %vm1657_vm0, %v1658_v35  ;;  %v282_v39 = vld [vmem:[%s1993_s8] sm:$0xff]  ;;  %v283_v40 = vld [vmem:[%s1993_s8 + $0x8] sm:$0xff]  ;;  %vm434_vm6 = vcmask 31744   ;;  %vm360_vm7 = vcmask 64512   ;;  %v1327_v6 = vld [vmem:[%s1999_s14 + $0x30] sm:$0xff]  ;;  %vm689_vm8 = vcmask 261120  }
  0x1e   :  { %1519 = vmatpush3.bf16.msra.mxu0 %v1518_v10  ;;  %v1524_v43 = vpack.c.bf16 %v283_v40, %v282_v39  ;;  %v359_v47 = vld [vmem:[%s1995_s10] sm:$0xff]  ;;  %v679_v61 = vld [vmem:[%s1999_s14 + $0x8] sm:$0xff]  ;;  %vm1200_vm9 = vcmask 254976  }
  0x1f   :  { %1523 = vmatprep.subr.bf16.mxu0 %v1656_v2  ;;  %1522 = vmatpush3.bf16.msra.mxu1 %v1521_v36  ;;  %v358_v48 = vld [vmem:[%s1994_s9] sm:$0xf]  ;;  %v1326_v1 = vld [vmem:[%s1999_s14 + $0x28] sm:$0xff] }
  0x20   :  { %v84_v3 = vld [vmem:[%s2013_s26] sm:$0x3]  ;;  %1420 = vmatprep.subr.mxu1 %v1658_v35  ;;  %v1336_v34 = vld [vmem:[%s1999_s14 + $0x48] sm:$0xff] }
  0x21   :  { %v269_v4 = vld [vmem:[%s2014_s29] sm:$0x3]  ;;  %1592 = vlog2.f32 %v84_v3  ;;  %v1098_v37 = vld [vmem:[#allocation3 + $0x48] sm:$0xff] }
  0x22   :  { %v270_v5 = vmul.f32 16.0, %v269_v4  ;;  %v180_v9 = vld [vmem:[%s2015_s19] sm:$0x3]  ;;  %v680_v4 = vld [vmem:[%s1999_s14 + $0x10] sm:$0xff]  ;;  %s2018_s19 = sld [smem:[#allocation14_spill]] }
  0x23   :  { %v1310_v12 = vadd.f32 3.1415927, %v180_v9  ;;  %v671_v21 = vld [vmem:[%s2016_s23] sm:$0x3] }
  0x24   :  { %v272_v8 = vmul.f32 0.01, %v270_v5  ;;  %v357_v50 = vld [vmem:[%s2017_s0] sm:$0x3]  ;;  %v681_v5 = vld [vmem:[%s1999_s14 + $0x18] sm:$0xff] }
  0x25   :  { %v182_v15 = vmul.f32 16.0, %v1310_v12  ;;  %v587_v51 = vld [vmem:[%s1997_s12] sm:$0xff]  ;;  %v1530_v7 = vpack.c.bf16 %v681_v5, %v680_v4 }
  0x26   :  { %v273_v11 = vmax.f32 %v272_v8, 0.0  ;;  %v512_v52 = vld [vmem:[%s1996_s11] sm:$0xff]  ;;  %v1328_v8 = vld [vmem:[%s1999_s14 + $0x38] sm:$0xff] }
  0x27   :  { %v184_v20 = vmul.f32 0.15915494, %v182_v15  ;;  %v678_v60 = vld [vmem:[%s1999_s14] sm:$0xff]  ;;  %v1542_v9 = vpack.c.bf16 %v1328_v8, %v1327_v6 }
  0x28   :  { %v274_v13 = vmin.f32 %v273_v11, 15.0  ;;  %v1325_v62 = vld [vmem:[%s1999_s14 + $0x20] sm:$0xff]  ;;  %v1527_v0 = vpack.c.bf16 %v679_v61, %v678_v60 }
  0x29   :  { %v185_v24 = vmax.f32 %v184_v20, 0.0  ;;  %v1539_v3 = vpack.c.bf16 %v1326_v1, %v1325_v62  ;;  %v763_v15 = vld [vmem:[#allocation3] sm:$0xff] }
  0x2a   :  { %v1580_v14 = vtrunc.f32 %v274_v13  ;;  %v931_v20 = vld [vmem:[#allocation3 + $0x20] sm:$0xff] }
  0x2b   :  { %v1593_v16 = vpop.eup %1592  ;;  %v186_v27 = vmin.f32 %v185_v24, 15.0  ;;  %v1335_v33 = vld [vmem:[%s1999_s14 + $0x40] sm:$0xff] }
  0x2c   :  { %v1581_v17 = vcvt.f32.s32 %v1580_v14  ;;  %v86_v18 = vmul.f32 0.6931472, %v1593_v16  ;;  %v1097_v36 = vld [vmem:[#allocation3 + $0x40] sm:$0xff]  ;;  %v1551_v40 = vpack.c.bf16 %v1336_v34, %v1335_v33 }
  0x2d   :  { %v1578_v30 = vtrunc.f32 %v186_v27 }
  0x2e   :  { %277 = vperm.xlu1 %1591, %v1581_v17   ;;  %v88_v19 = vmul.f32 1.442695, %v86_v18 }
  0x2f   :  { %v1579_v32 = vcvt.f32.s32 %v1578_v30  ;;  %v934_v30 = vld [vmem:[#allocation3 + $0x38] sm:$0xff] }
  0x30   :  { %v1307_v22 = vadd.f32 3.321928, %v88_v19  ;;  %v764_v19 = vld [vmem:[#allocation3 + $0x8] sm:$0xff] }
  0x31   :  { %v1533_v24 = vpack.c.bf16 %v764_v19, %v763_v15  ;;  %v1340_v15 = vld [vmem:[%s2000_s15 + $0x2] ss:$0 sm:$0xff] }
  0x32   :  { %674 = vperm.xlu1 %1591, %v671_v21   ;;  %v90_v23 = vmul.f32 16.0, %v1307_v22  ;;  %v932_v21 = vld [vmem:[#allocation3 + $0x28] sm:$0xff]  ;;  %v1320_v22 = vld [vmem:[%s1998_s13] ss:$0 sm:$0xff] }
  0x34   :  { %v92_v25 = vmul.f32 0.13082403, %v90_v23 }
  0x36   :  { %v93_v26 = vmax.f32 %v92_v25, 0.0  ;;  %v1545_v25 = vpack.c.bf16 %v932_v21, %v931_v20 }
  0x38   :  { %v94_v28 = vmin.f32 %v93_v26, 15.0  ;;  %v765_v26 = vld [vmem:[#allocation3 + $0x10] sm:$0xff] }
  0x3a   :  { %v1576_v29 = vtrunc.f32 %v94_v28  ;;  %v766_v28 = vld [vmem:[#allocation3 + $0x18] sm:$0xff] }
  0x3c   :  { %v1577_v31 = vcvt.f32.s32 %v1576_v29  ;;  %v933_v29 = vld [vmem:[#allocation3 + $0x30] sm:$0xff] }
  0x3e   :  { %99 = vperm.xlu0 %1590, %v1577_v31   ;;  %v1536_v31 = vpack.c.bf16 %v766_v28, %v765_v26 }
  0x42   :  { %189 = vperm.xlu0 %1590, %v1579_v32   ;;  %v1548_v32 = vpack.c.bf16 %v934_v30, %v933_v29 }
  0xad   :  { %v278_v42 = vpop.permute.xlu1 %277 }
  0xae   :  { %vm279_vm3 = vcmp.eq.s32.totalorder %v97_v38, %v278_v42  ;;  %v1337_v42 = vld [vmem:[%s1999_s14 + $0x50] sm:$0xff] }
  0xaf   :  { %v1313_v45 = vsel %vm279_vm3, 1.0, %v1658_v35 }
  0xb1   :  { %v675_v39 = vpop.permute.xlu1 %674 }
  0xbd   :  { %v100_v41 = vpop.permute.xlu0 %99 }
  0xbe   :  { %vm101_vm2 = vcmp.eq.s32.totalorder %v97_v38, %v100_v41  ;;  %v1557_v41 = vpack.c.bf16 %v1098_v37, %v1097_v36 }
  0xbf   :  { %v1308_v44 = vsel %vm101_vm2, 1.0, %v1658_v35 }
  0xc0   :  { %1404 = vmatmul.mubr.msk.f32.vlgmr.msra.gmra.mrb[0].mxu0 %vm106_vm1, %v1308_v44  ;;  %v1338_v44 = vld [vmem:[%s1999_s14 + $0x58] sm:$0xff] }
  0xc1   :  { %v190_v46 = vpop.permute.xlu0 %189  ;;  %1525 = vmatpush3.bf16.msra.mxu0 %v1524_v43  ;;  %1417 = vmatprep.mubr.msk.f32.mxu0 %vm1657_vm0, %v1658_v35 }
  0xc2   :  { %vm191_vm4 = vcmp.eq.s32.totalorder %v97_v38, %v190_v46  ;;  %1425 = vmatprep.subr.mxu0 %v1658_v35  ;;  %v670_v38 = vld [vmem:[%s2018_s19] sm:$0x3] }
  0xc3   :  { %v1311_v49 = vsel %vm191_vm4, 1.0, %v1658_v35  ;;  %v1914_v43 = vmul.f32 %v675_v39, %v670_v38  ;;  %v1100_v46 = vld [vmem:[#allocation3 + $0x58] sm:$0xff] }
  0xc4   :  { %1411 = vmatmul.mubr.msk.f32.vlgmr.msra.gmra.mrb[0].mxu1 %vm106_vm1, %v1311_v49  ;;  %1418 = vmatmul.mubr.msk.f32.vlgmr.msra.gmra.mrb[2].mxu0 %vm106_vm1, %v1313_v45  ;;  %v1099_v45 = vld [vmem:[#allocation3 + $0x50] sm:$0xff]  ;;  %v1202_v49 = vld [vmem:[%s2003_s18] sm:$0xff] }
  0xc5   :  { %1421 = vmatpush3.msra.mxu1 %v359_v47  ;;  %1426 = vmatpush3.msk.msra.mxu0 %vm438_vm5, %v358_v48  ;;  %v1554_v47 = vpack.c.bf16 %v1338_v44, %v1337_v42  ;;  %v1560_v48 = vpack.c.bf16 %v1100_v46, %v1099_v45 }
  0xc6   :  { %1422 = vmatprep.mubr.msk.f32.mxu1 %vm1657_vm0, %v1658_v35  ;;  %1427 = vmatprep.mubr.msk.f32.mxu0 %vm1657_vm0, %v1658_v35 }
  0xc7   :  { %1430 = vmatprep.subr.mxu1 %v1658_v35  ;;  %1435 = vmatprep.subr.mxu0 %v1658_v35 }
  0xc8   :  { %1428 = vmatmul.mubr.msk.f32.vlgmr.msra.gmra.mrb[4].mxu0 %vm434_vm6, %v357_v50  ;;  %v1203_v50 = vld [vmem:[%s2003_s18 + $0x8] sm:$0xff] }
  0xc9   :  { %1437 = vmatprep.mubr.msk.f32.mxu0 %vm1657_vm0, %v1658_v35  ;;  %1436 = vmatpush3.msra.mxu0 %v587_v51  ;;  %v1204_v51 = vld [vmem:[%s2003_s18 + $0x10] sm:$0xff] }
  0xca   :  { %1538 = vmatprep.subr.bf16.mxu0 %v1656_v2 }
 0x193   :  { %v176_v53 = vpop.f32.mrb[0].mxu0 }
 0x194   :  { %v1405_v54 = vpop.f32.mrb[1].mxu0  ;;  %1423 = vmatmul.mubr.msk.f32.vlgmr.msra.gmra.mrb[2].mxu1 %vm360_vm7, %v176_v53  ;;  %v1205_v53 = vld [vmem:[%s2003_s18 + $0x18] sm:$0xff] }
 0x195   :  { %1431 = vmatpush3.msra.mxu1 %v512_v52  ;;  %1432 = vmatprep.mubr.msk.f32.mxu1 %vm1657_vm0, %v1658_v35  ;;  %v1563_v52 = vpack.c.bf16 %v1203_v50, %v1202_v49  ;;  %v1566_v54 = vpack.c.bf16 %v1205_v53, %v1204_v51 }
 0x196   :  { %1526 = vmatprep.subr.bf16.mxu1 %v1656_v2 }
 0x197   :  { %v265_v55 = vpop.f32.mrb[0].mxu1  ;;  %v353_v56 = vpop.f32.mrb[2].mxu0 }
 0x198   :  { %v1412_v57 = vpop.f32.mrb[1].mxu1  ;;  %1433 = vmatmul.mubr.msk.f32.vlgmr.msra.gmra.mrb[4].mxu1 %vm360_vm7, %v265_v55  ;;  %v1419_v58 = vpop.f32.mrb[3].mxu0  ;;  %1438 = vmatmul.mubr.msk.f32.vlgmr.msra.gmra.mrb[6].mxu0 %vm360_vm7, %v353_v56  ;;  %v1323_v55 = vld [vmem:[%s2002_s17] ss:$0 sm:$0xff]  ;;  %v1330_v56 = vld [vmem:[%s2000_s15 + $0x1] ss:$0 sm:$0xff] }
 0x199   :  { %1448 = vmatprep.mubr.msk.f32.mxu1 %vm1657_vm0, %v1658_v35  ;;  %1470 = vmatprep.mubr.msk.f32.mxu0 %vm1657_vm0, %v1658_v35  ;;  %v1333_v57 = vld [vmem:[%s2002_s17 + $0x1] ss:$0 sm:$0xff] }
 0x19a   :  { %1528 = vmatpush3.bf16.msra.mxu1 %v1527_v0  ;;  %1540 = vmatpush3.bf16.msra.mxu0 %v1539_v3 }
 0x19b   :  { %v508_v59 = vpop.f32.mrb[4].mxu0  ;;  %1529 = vmatprep.subr.bf16.mxu1 %v1656_v2  ;;  %1541 = vmatprep.subr.bf16.mxu0 %v1656_v2 }
 0x19c   :  { %v1429_v63 = vpop.f32.mrb[5].mxu0 }
 0x19e   :  { %1531 = vmatpush3.bf16.msra.mxu1 %v1530_v7  ;;  %1543 = vmatpush3.bf16.msra.mxu0 %v1542_v9 }
 0x19f   :  { %1532 = vmatprep.subr.bf16.mxu1 %v1656_v2  ;;  %1544 = vmatprep.subr.bf16.mxu0 %v1656_v2 }
 0x267   :  { %v430_v10 = vpop.f32.mrb[2].mxu1 }
 0x268   :  { %v509_v11 = vadd.f32 %v508_v59, %v430_v10  ;;  %v1424_v12 = vpop.f32.mrb[3].mxu1  ;;  %v1570_v59 = vadd.f32 %v1333_v57, %v1330_v56 }
 0x26b   :  { %v582_v13 = vpop.f32.mrb[4].mxu1  ;;  %v657_v14 = vpop.f32.mrb[6].mxu0 }
 0x26c   :  { %v586_v16 = vadd.f32 %v582_v13, %v509_v11  ;;  %v1434_v17 = vpop.f32.mrb[5].mxu1  ;;  %v1439_v18 = vpop.f32.mrb[7].mxu0  ;;  %v1343_v13 = vld [vmem:[%s2002_s17 + $0x2] ss:$0 sm:$0xff]  ;;  %s1659_s17 = smov [#allocation6]  }
 0x26e   :  { %v661_v23 = vadd.f32 %v657_v14, %v586_v16 }
 0x270   :  { %v669_v27 = vadd.f32 %v1320_v22, %v661_v23 }
 0x272   :  { %1449 = vmatmul.mubr.msk.f32.vlgmr.msra.gmra.mrb[6].mxu1 %vm689_vm8, %v669_v27  ;;  %1471 = vmatmul.mubr.msk.f32.vlgmr.msra.gmra.mrb[8].mxu0 %vm689_vm8, %v669_v27 }
 0x273   :  { %1534 = vmatpush3.bf16.msra.mxu1 %v1533_v24  ;;  %1546 = vmatpush3.bf16.msra.mxu0 %v1545_v25 }
 0x274   :  { %1535 = vmatprep.subr.bf16.mxu1 %v1656_v2  ;;  %1547 = vmatprep.subr.bf16.mxu0 %v1656_v2 }
 0x275   :  { %1459 = vmatprep.mubr.msk.f32.mxu1 %vm1657_vm0, %v1658_v35  ;;  %1481 = vmatprep.mubr.msk.f32.mxu0 %vm1657_vm0, %v1658_v35 }
 0x277   :  { %1537 = vmatpush3.bf16.msra.mxu1 %v1536_v31  ;;  %1549 = vmatpush3.bf16.msra.mxu0 %v1548_v32 }
 0x278   :  { %1550 = vmatprep.subr.bf16.mxu1 %v1656_v2  ;;  %1556 = vmatprep.subr.bf16.mxu0 %v1656_v2 }
 0x27a   :  { %1460 = vmatmul.mubr.msk.f32.vlgmr.msra.gmra.mrb[6].mxu1 %vm689_vm8, %v1914_v43  ;;  %1482 = vmatmul.mubr.msk.f32.vlgmr.msra.gmra.mrb[8].mxu0 %vm689_vm8, %v1914_v43 }
 0x27b   :  { %1552 = vmatpush3.bf16.msra.mxu1 %v1551_v40  ;;  %1558 = vmatpush3.bf16.msra.mxu0 %v1557_v41 }
 0x27c   :  { %1553 = vmatprep.subr.bf16.mxu1 %v1656_v2  ;;  %1559 = vmatprep.subr.bf16.mxu0 %v1656_v2 }
 0x27d   :  { %1492 = vmatprep.mubr.msk.f32.mxu1 %vm1657_vm0, %v1658_v35  ;;  %1503 = vmatprep.mubr.msk.f32.mxu0 %vm1657_vm0, %v1658_v35 }
 0x27f   :  { %1555 = vmatpush3.bf16.msra.mxu1 %v1554_v47  ;;  %1561 = vmatpush3.bf16.msra.mxu0 %v1560_v48 }
 0x280   :  { %1562 = vmatprep.subr.bf16.mxu1 %v1656_v2 }
 0x282   :  { %1493 = vmatmul.mubr.msk.f32.vlgmr.msra.gmra.mrb[8].mxu1 %vm689_vm8, %v669_v27  ;;  %1504 = vmatmul.mubr.msk.f32.vlgmr.msra.gmra.mrb[10].mxu0 %vm689_vm8, %v1914_v43 }
 0x283   :  { %1514 = vmatprep.mubr.msk.f32.mxu1 %vm1657_vm0, %v1658_v35  ;;  %1564 = vmatpush3.bf16.msra.mxu1 %v1563_v52  ;;  %v1321_v35 = vld [vmem:[%s2000_s15] ss:$0 sm:$0xff]  ;;  %s1296_s15 = sshll.u32 %s1659_s17, 4  ;;  %s1297_s15 = int_to_ptr.vmem [resolvable:$true] %s1296_s15 }
 0x284   :  { %1565 = vmatprep.subr.bf16.mxu1 %v1656_v2  ;;  %v1568_v58 = vadd.f32 %v1323_v55, %v1321_v35  ;;  %s1626_s30 = scalar_lea.vmem %s1297_s15, 32  ;;  %p1631_p9 = scmp.lt.s32.totalorder %s1297_s15, %s1297_s15 }
 0x285   :  { %p1627_p8 = scmp.ne.s32.totalorder %s1297_s15, %s1626_s30  ;;  %p1632_p10 = scmp.lt.s32.totalorder %s1626_s30, %s1626_s30 }
 0x287   :  { %1567 = vmatpush3.bf16.msra.mxu1 %v1566_v54  ;;  %p1633_p11 = por %p1632_p10, %p1631_p9 }
 0x289   :  { %p1634_p12 = pnand %p1633_p11, %p1627_p8 }
 0x34d   :  { %v843_v2 = vpop.f32.mrb[6].mxu1  ;;  %v1009_v60 = vpop.f32.mrb[8].mxu0 }
 0x34e   :  { %v1569_v61 = vadd.f32 %v1568_v58, %v843_v2  ;;  %v1461_v62 = vpop.f32.mrb[7].mxu1  ;;  %v1483_v63 = vpop.f32.mrb[9].mxu0  ;;  %v1571_v0 = vadd.f32 %v1570_v59, %v1009_v60 }
 0x350   :  { %v1180_v1 = vsub.f32 0.0, %v1569_v61  ;;  %v1187_v4 = vsub.f32 0.0, %v1571_v0 }
 0x352   :  { %v1181_v3 = vmul.f32 1.442695, %v1180_v1  ;;  %v1188_v9 = vmul.f32 1.442695, %v1187_v4 }
 0x354   :  { %1594 = vpow2.f32 %v1181_v3 }
 0x355   :  { %v1092_v5 = vpop.f32.mrb[8].mxu1  ;;  %v1175_v6 = vpop.f32.mrb[10].mxu0  ;;  %1596 = vpow2.f32 %v1188_v9 }
 0x356   :  { %v1494_v7 = vpop.f32.mrb[9].mxu1  ;;  %v1505_v8 = vpop.f32.mrb[11].mxu0  ;;  %v1176_v16 = vadd.f32 %v1343_v13, %v1175_v6  ;;  %v1093_v18 = vadd.f32 %v1340_v15, %v1092_v5 }
 0x35e   :  { %v1595_v10 = vpop.eup %1594 }
 0x35f   :  { %v1183_v11 = vadd.f32 1.0, %v1595_v10  ;;  %v1597_v12 = vpop.eup %1596 }
 0x360   :  { %v1190_v14 = vadd.f32 1.0, %v1597_v12 }
 0x361   :  { %1598 = vrcp.f32 %v1183_v11 }
 0x362   :  { %1600 = vrcp.f32 %v1190_v14 }
 0x36b   :  { %v1599_v17 = vpop.eup %1598 }
 0x36c   :  { %v1193_v19 = vmul.f32 %v1599_v17, %v1176_v16  ;;  %v1601_v21 = vpop.eup %1600 }
 0x36d   :  { %v1196_v22 = vsub.f32 1.0, %v1601_v21  ;;  %v1198_v25 = vmul.f32 %v1601_v21, %v1914_v43 }
 0x36e   :  { %v1194_v20 = vadd.f32 %v1193_v19, %v1093_v18 }
 0x370   :  { %1602 = vtanh.f32 %v1194_v20 }
 0x37a   :  { %v1603_v23 = vpop.eup %1602 }
 0x37b   :  { %v1197_v24 = vmul.f32 %v1603_v23, %v1196_v22 }
 0x37d   :  { %v1199_v26 = vadd.f32 %v1198_v25, %v1197_v24 }
 0x37f   :  { %1515 = vmatmul.mubr.msk.f32.vlgmr.msra.gmra.mrb[10].mxu1 %vm689_vm8, %v1199_v26  ;;  %1201 = vst.msk [vmem:[#allocation6] sm:$0x3] %vm1200_vm9, %v1199_v26 }
 0x380   :  { %1637 = shalt.err (!%p1634_p12)
}
 0x381   :  { %s1638_s11 = scalar_lea.hbm %s2006_s21, 32 }
 0x382   :  { %p1639_p13 = scmp.ne.s32.totalorder %s2006_s21, %s1638_s11  ;;  %p1642_p0 = scmp.lt.u32.totalorder %s1638_s11, %s2006_s21 }
 0x384   :  { %p1644_p1 = pnand %p1642_p0, %p1639_p13 }
 0x386   :  { %1647 = shalt.err (!%p1644_p1)
}
 0x387   :  { %1299 = dma.vmem_to_hbm [thread:$0]  %s1297_s15, 32, %s2006_s21, [#allocation5]   ;;  %v1345_v27 = vld [vmem:[#allocation2] ss:$0 sm:$0xff]  ;;  %vm1286_vm10 = vcmask 1024  }
 0x452   :  { %v1282_v28 = vpop.f32.mrb[10].mxu1 }
 0x453   :  { %v1283_v29 = vadd.f32 %v1345_v27, %v1282_v28  ;;  %v1516_v30 = vpop.f32.mrb[11].mxu1 }
 0x455   :  { %1287 = vst.msk [vmem:[%s2005_s20] sm:$0x3] %vm1286_vm10, %v1283_v29 }
 0x456   :  { %1650 = dma.done.wait [#allocation5], 32  }
 0x457   :  { %1651 = vsyncadd [#allocation5], 4294967264 }
 0x458   :  { %1305 = vsyncpa [#allocation4], 1 }
 0x459   :  { %1306 = vsyncpa [#allocation5], 1 }

</bundles_post_ra>
